<compile_context>
chip_gen: v7x
topology: tpu7x:2x2x1
jax: 0.10.0
libtpu: 0.0.40
codegen_flags: <defaults>
</compile_context>

<pallas_src>
import math

import jax
import jax.numpy as jnp
from jax.experimental import pallas as pl
from jax.experimental.pallas import tpu as pltpu


def _target_tile_bytes() -> int:
    """2 MiB tiles are safe on every generation; v6e/v7x prefer 4 MiB tiles
    (better per-step-overhead amortization at 1.4-3.2 TB/s HBM)."""
    try:
        kind = jax.devices()[0].device_kind.lower()
    except Exception:  # pragma: no cover - defensive
        kind = ""
    if "v6" in kind or "v7" in kind:
        return 4 * 1024 * 1024
    return 2 * 1024 * 1024


_TILE_BYTES = _target_tile_bytes()
_COL_CAP = 2048          # lane-axis tile cap (multiple of 128)
_MIN_ROW_STEPS = 4       # aim for >= 4 grid steps (pipelining + megacore)


def _gain_kernel(amp_ref, x_ref, o_ref):
    # amp_ref: (1,) f32 SMEM scalar (scalar prefetch)
    # x_ref / o_ref: VMEM tiles of shape (row_tile, col_tile)
    amp = amp_ref[0]
    y = x_ref[...].astype(jnp.float32) * amp          # compute in f32
    # clamp to [-1, 1]  (== x[x>1]=1; x[x<-1]=-1; NaN passes through like torch)
    y = jnp.minimum(jnp.maximum(y, -1.0), 1.0)
    o_ref[...] = y.astype(o_ref.dtype)


def _plan_2d(shape, dtype):
    """Pick a copy-free 2-D view (rows, cols), block sizes and grid."""
    n = math.prod(shape)
    itemsize = jnp.dtype(dtype).itemsize
    sub = {1: 32, 2: 16, 4: 8}.get(itemsize, 8)       # sublane granularity

    if len(shape) >= 2:
        rows, cols = n // shape[-1], shape[-1]
    else:
        rows, cols = 1, n

    # Prefer a lane-dense flattening when it is *free* (contiguous reshape):
    # used when the natural last dim is narrow (< 128) or the natural view is
    # one very long row.  If nothing divides, keep the natural view (still
    # zero-copy; Pallas masks the ragged lane edge).
    if cols < 128 or (rows == 1 and cols > _COL_CAP):
        for lane in (2048, 1024, 512, 256, 128):
            if n % lane == 0:
                rows, cols = n // lane, lane
                break

    # Lane-axis tiling: full extent when small, else a multiple of 128 with a
    # masked final block.
    col_tile = cols if cols <= _COL_CAP else _COL_CAP

    # Sublane-axis tiling: cap tile bytes, but aim for >= _MIN_ROW_STEPS grid
    # steps so DMA/compute overlap and megacore sharding kick in.
    max_rows_by_bytes = max(sub, (_TILE_BYTES // (col_tile * itemsize)) // sub * sub)
    rows_for_min_steps = sub * pl.cdiv(rows, sub * _MIN_ROW_STEPS)
    row_tile = max(sub, min(max_rows_by_bytes, rows_for_min_steps))
    if row_tile >= rows:
        row_tile = rows                                # full extent

    grid = (pl.cdiv(rows, row_tile), pl.cdiv(cols, col_tile))
    return rows, cols, row_tile, col_tile, grid


@jax.jit
def gain(x: jax.Array, gain_db=0.0) -> jax.Array:
    """Apply `gain_db` dB of gain and hard-clip to [-1, 1]."""
    shape = x.shape
    rows, cols, row_tile, col_tile, grid = _plan_2d(shape, x.dtype)
    x2 = x.reshape(rows, cols)                         # contiguous: free under jit

    # dB -> amplitude in f32; traced scalar -> no recompile when the value changes.
    amp = (10.0 ** (jnp.asarray(gain_db, jnp.float32) / 20.0)).astype(jnp.float32)
    amp = amp.reshape(1)

    out = pl.pallas_call(
        _gain_kernel,
        out_shape=jax.ShapeDtypeStruct((rows, cols), x.dtype),
        grid_spec=pltpu.PrefetchScalarGridSpec(
            num_scalar_prefetch=1,
            grid=grid,
            in_specs=[
                pl.BlockSpec((row_tile, col_tile), lambda i, j, amp_ref: (i, j)),
            ],
            out_specs=pl.BlockSpec((row_tile, col_tile), lambda i, j, amp_ref: (i, j)),
        ),
        compiler_params=pltpu.CompilerParams(
            dimension_semantics=("parallel", "parallel"),
        ),
    )(amp, x2)

    return out.reshape(shape)


if __name__ == "__main__":
    key = jax.random.PRNGKey(0)
    k1, k2, k3, k4, k5 = jax.random.split(key, 5)

    def ref(x, g):
        amp = 10.0 ** (jnp.asarray(g, jnp.float32) / 20.0)
        y = jnp.clip(x.astype(jnp.float32) * amp, -1.0, 1.0)
        return y.astype(x.dtype)

    # 1) small audio-like (batch, channels, samples); scaled so clipping triggers
    x1 = 2.0 * jax.random.normal(k1, (2, 4, 1024), dtype=jnp.float32)
    y1 = jax.block_until_ready(gain(x1, 6.0))
    assert y1.shape == x1.shape and y1.dtype == x1.dtype
    assert jnp.allclose(y1, ref(x1, 6.0), atol=1e-6, rtol=1e-6)

    # default gain=0 path (amp == 1)
    y0 = jax.block_until_ready(gain(x1))
    assert jnp.allclose(y0, ref(x1, 0.0), atol=1e-6, rtol=1e-6)

    # 2) last dim not a multiple of 128 -> full-extent lane block, zero padding passes
    x2 = 3.0 * jax.random.normal(k2, (1, 3, 1000), dtype=jnp.float32)
    y2 = jax.block_until_ready(gain(x2, -3.0))
    assert jnp.allclose(y2, ref(x2, -3.0), atol=1e-6, rtol=1e-6)

    # 3) ragged row tiling: partial final row block is masked in-kernel
    x3 = 1.5 * jax.random.normal(k3, (5, 3, 300), dtype=jnp.float32)
    y3 = jax.block_until_ready(gain(x3, 2.5))
    assert jnp.allclose(y3, ref(x3, 2.5), atol=1e-6, rtol=1e-6)

    # 4) long sample axis: multi-step lane grid with masked tail block
    x4 = 2.0 * jax.random.normal(k4, (2, 2, 40000), dtype=jnp.float32)
    y4 = jax.block_until_ready(gain(x4, 4.0))
    assert jnp.allclose(y4, ref(x4, 4.0), atol=1e-6, rtol=1e-6)

    # 5) bf16 input: multiply/clamp computed in f32, cast on store
    x5 = (2.0 * jax.random.normal(k5, (2, 4, 512), dtype=jnp.float32)).astype(jnp.bfloat16)
    y5 = jax.block_until_ready(gain(x5, 6.0))
    assert y5.dtype == jnp.bfloat16
    assert jnp.allclose(y5.astype(jnp.float32), ref(x5, 6.0).astype(jnp.float32),
                        atol=2e-2, rtol=2e-2)

    print("KERNEL_OK")
</pallas_src>

<mosaic_0001>
module attributes {stable_mosaic.version = 11 : i64} {
  func.func @_gain_kernel(%arg0: i32, %arg1: i32, %arg2: memref<1xf32, #tpu.memory_space<smem>>, %arg3: memref<8x1024xf32, #tpu.memory_space<vmem>>, %arg4: memref<8x1024xf32, #tpu.memory_space<vmem>>) attributes {dimension_semantics = [#tpu.dimension_semantics<parallel>, #tpu.dimension_semantics<parallel>], iteration_bounds = array<i64: 1, 1>, scalar_prefetch = 1 : i64, scratch_operands = 0 : i64, tpu.core_type = #tpu.core_type<tc>, window_params = [{transform_indices = @transform_0, window_bounds = array<i64: 8, 1024>}, {transform_indices = @transform_1, window_bounds = array<i64: 8, 1024>}]} {
    %c0 = arith.constant 0 : index
    %0 = memref.load %arg2[%c0] : memref<1xf32, #tpu.memory_space<smem>>
    %c0_0 = arith.constant 0 : index
    %c0_1 = arith.constant 0 : index
    %1 = vector.load %arg3[%c0_0, %c0_1] : memref<8x1024xf32, #tpu.memory_space<vmem>>, vector<8x1024xf32>
    %2 = vector.broadcast %0 : f32 to vector<8x1024xf32>
    %3 = arith.mulf %1, %2 : vector<8x1024xf32>
    %cst = arith.constant -1.000000e+00 : f32
    %4 = vector.broadcast %cst : f32 to vector<8x1024xf32>
    %5 = arith.maximumf %3, %4 : vector<8x1024xf32>
    %cst_2 = arith.constant 1.000000e+00 : f32
    %6 = vector.broadcast %cst_2 : f32 to vector<8x1024xf32>
    %7 = arith.minimumf %5, %6 : vector<8x1024xf32>
    %c0_3 = arith.constant 0 : index
    %c0_4 = arith.constant 0 : index
    %8 = vector.load %arg4[%c0_3, %c0_4] : memref<8x1024xf32, #tpu.memory_space<vmem>>, vector<8x1024xf32>
    tpu.vector_store %arg4[%c0_3, %c0_4], %7 {strides = array<i32>} : memref<8x1024xf32, #tpu.memory_space<vmem>>, vector<8x1024xf32>,
    return
  }
  func.func @transform_0(%arg0: i32, %arg1: i32, %arg2: memref<1xf32, #tpu.memory_space<smem>>) -> (i32, i32) {
    %c0_i32 = arith.constant 0 : i32
    return %arg0, %arg1 : i32, i32
  }
  func.func @transform_1(%arg0: i32, %arg1: i32, %arg2: memref<1xf32, #tpu.memory_space<smem>>) -> (i32, i32) {
    %c0_i32 = arith.constant 0 : i32
    return %arg0, %arg1 : i32, i32
  }
}

</mosaic_0001>

<bundles_post_ra>
// kernel: gain.1
= control target key start
LH: loop header
LB: loop body
LE: loop exit
PB: predicated region body
PF: predicated region fallthrough
CT: control target
= control target key end

     0   :  { %s130_s0 = inlined_call_operand.<no memory space> [shape: f32[1], index: 0, kind: input, shape index: {}]   ;;  %s131_s1 = inlined_call_operand.vmem [shape: f32[8,1024], index: 1, kind: input, shape index: {}]   ;;  %s132_s2 = inlined_call_operand.vmem [shape: f32[8,1024], index: 2, kind: output, shape index: {}]  }
   0x1   :  { %v11_v0 = vld [vmem:[%s131_s1] sm:$0xff]  ;;  %v19_v1 = vstv %s130_s0  ;;  %v12_v2 = vld [vmem:[%s131_s1 + $0x8] sm:$0xff]  ;;  %v13_v3 = vld [vmem:[%s131_s1 + $0x10] sm:$0xff] }
   0x2   :  { %v20_v4 = vmul.f32 %v19_v1, %v11_v0  ;;  %v21_v5 = vmul.f32 %v19_v1, %v12_v2  ;;  %v22_v6 = vmul.f32 %v19_v1, %v13_v3  ;;  %v14_v7 = vld [vmem:[%s131_s1 + $0x18] sm:$0xff]  ;;  %v15_v8 = vld [vmem:[%s131_s1 + $0x20] sm:$0xff]  ;;  %v16_v9 = vld [vmem:[%s131_s1 + $0x28] sm:$0xff] }
   0x3   :  { %v23_v10 = vmul.f32 %v19_v1, %v14_v7  ;;  %v24_v11 = vmul.f32 %v19_v1, %v15_v8  ;;  %v25_v12 = vmul.f32 %v19_v1, %v16_v9  ;;  %v17_v13 = vld [vmem:[%s131_s1 + $0x30] sm:$0xff]  ;;  %v18_v14 = vld [vmem:[%s131_s1 + $0x38] sm:$0xff] }
   0x4   :  { %v56_v15 = vclamps-f32 %v20_v4, 1.0  ;;  %v57_v16 = vclamps-f32 %v21_v5, 1.0  ;;  %v58_v17 = vclamps-f32 %v22_v6, 1.0  ;;  %v26_v18 = vmul.f32 %v19_v1, %v17_v13 }
   0x5   :  { %v59_v19 = vclamps-f32 %v23_v10, 1.0  ;;  %v60_v20 = vclamps-f32 %v24_v11, 1.0  ;;  %v61_v21 = vclamps-f32 %v25_v12, 1.0  ;;  %v27_v22 = vmul.f32 %v19_v1, %v18_v14 }
   0x6   :  { %44 = vst [vmem:[%s132_s2] sm:$0xff] %v56_v15  ;;  %45 = vst [vmem:[%s132_s2 + $0x8] sm:$0xff] %v57_v16  ;;  %v62_v23 = vclamps-f32 %v26_v18, 1.0 }
   0x7   :  { %46 = vst [vmem:[%s132_s2 + $0x10] sm:$0xff] %v58_v17  ;;  %47 = vst [vmem:[%s132_s2 + $0x18] sm:$0xff] %v59_v19  ;;  %v63_v24 = vclamps-f32 %v27_v22, 1.0 }
   0x8   :  { %48 = vst [vmem:[%s132_s2 + $0x20] sm:$0xff] %v60_v20  ;;  %49 = vst [vmem:[%s132_s2 + $0x28] sm:$0xff] %v61_v21 }
   0x9   :  { %50 = vst [vmem:[%s132_s2 + $0x30] sm:$0xff] %v62_v23  ;;  %51 = vst [vmem:[%s132_s2 + $0x38] sm:$0xff] %v63_v24 }

</bundles_post_ra>
